<compile_context>
chip_gen: v5e
topology: v5e:2x2
jax: 0.10.0
libtpu: 0.0.40
codegen_flags: <defaults>
</compile_context>

<pallas_src>
import functools

import jax
import jax.numpy as jnp
from jax.experimental import pallas as pl
from jax.experimental.pallas import tpu as pltpu


# ---------------------------------------------------------------------------
# Activations (f32 elementwise inside the kernel)
# ---------------------------------------------------------------------------
def _leaky_relu(x, slope=0.2):
    return jnp.where(x > 0, x, slope * x)


def _tanh(x):
    return jnp.tanh(x)


def _sigmoid_eup(x):
    # 1 / (1 + exp(-x)) with the reciprocal on the (otherwise idle) EUP slot.
    return pl.reciprocal(1.0 + jnp.exp(-x), approx=True)


# ---------------------------------------------------------------------------
# Pallas kernel: fused 2-layer MLP  y = act2( act1(x @ W1 + b1) @ W2 + b2 )
# bf16 MXU operands, f32 accumulation, f32 elementwise path.
# ---------------------------------------------------------------------------
def _mlp2_kernel(x_ref, w1_ref, b1_ref, w2_ref, b2_ref, o_ref, *, act1, act2):
    h = jnp.dot(x_ref[...], w1_ref[...], preferred_element_type=jnp.float32)
    h = act1(h + b1_ref[...])                       # f32 bias add + activation
    y = jnp.dot(h.astype(jnp.bfloat16), w2_ref[...],
                preferred_element_type=jnp.float32)
    o_ref[...] = act2(y + b2_ref[...]).astype(o_ref.dtype)


def _round_up(n, m):
    return ((n + m - 1) // m) * m


def _mlp2(x, w1, b1, w2, b2, act1, act2):
    """act2(act1(x @ w1 + b1) @ w2 + b2) as a batch-gridded Pallas kernel.

    x: (B, K).  w1: (K, H) bf16.  w2: (H, N) bf16 with N a multiple of 128
    (lane-dense output).  Biases f32.  Returns (B, N) f32.
    """
    B, K = x.shape
    H = w1.shape[1]
    N = w2.shape[1]

    # Batch tiling: sublane-aligned tiles; for B < 128 the single tile equals
    # the (padded) full batch, for large B we stream 128-row tiles while the
    # weights stay VMEM-resident (their index_map is constant).
    tm = 128 if B >= 128 else _round_up(B, 8)
    padded_b = _round_up(B, tm)
    x_p = jnp.pad(x, ((0, padded_b - B), (0, 0))).astype(jnp.bfloat16)

    kernel = functools.partial(_mlp2_kernel, act1=act1, act2=act2)
    out = pl.pallas_call(
        kernel,
        out_shape=jax.ShapeDtypeStruct((padded_b, N), jnp.float32),
        grid_spec=pltpu.PrefetchScalarGridSpec(
            num_scalar_prefetch=0,
            grid=(padded_b // tm,),
            in_specs=[
                pl.BlockSpec((tm, K), lambda i: (i, 0)),   # x tile
                pl.BlockSpec((K, H), lambda i: (0, 0)),    # w1 (resident)
                pl.BlockSpec((1, H), lambda i: (0, 0)),    # b1 (resident)
                pl.BlockSpec((H, N), lambda i: (0, 0)),    # w2 (resident)
                pl.BlockSpec((1, N), lambda i: (0, 0)),    # b2 (resident)
            ],
            out_specs=pl.BlockSpec((tm, N), lambda i: (i, 0)),
        ),
        # v7x: two TensorCores each take half of the batch tiles.
        compiler_params=pltpu.CompilerParams(
            dimension_semantics=("parallel",)),
    )(x_p, w1, b1.reshape(1, -1).astype(jnp.float32),
      w2, b2.reshape(1, -1).astype(jnp.float32))
    return out[:B]


# ---------------------------------------------------------------------------
# GAN module (JAX side): parameter setup + forward dispatch
# ---------------------------------------------------------------------------
class GAN:
    def __init__(self, *, latent_dim=32, hidden_dim=64,
                 channels=4, height=16, width=16, key=None):
        if key is None:
            key = jax.random.PRNGKey(0)
        self.latent_dim = latent_dim
        self.channels = channels
        self.height = height
        self.width = width
        img_dim = channels * height * width

        k = jax.random.split(key, 8)
        scale = 0.05
        # Weight matrices stored as bf16 (halves the weight DMA, native MXU
        # operand dtype); biases stay f32 for the elementwise path.
        # Generator params: Z -> hidden -> C*H*W
        self.g_w1 = (scale * jax.random.normal(
            k[0], (latent_dim, hidden_dim), jnp.float32)).astype(jnp.bfloat16)
        self.g_b1 = scale * jax.random.normal(k[1], (hidden_dim,), jnp.float32)
        self.g_w2 = (scale * jax.random.normal(
            k[2], (hidden_dim, img_dim), jnp.float32)).astype(jnp.bfloat16)
        self.g_b2 = scale * jax.random.normal(k[3], (img_dim,), jnp.float32)
        # Discriminator params: C*H*W -> hidden -> 1
        self.d_w1 = (scale * jax.random.normal(
            k[4], (img_dim, hidden_dim), jnp.float32)).astype(jnp.bfloat16)
        self.d_b1 = scale * jax.random.normal(k[5], (hidden_dim,), jnp.float32)
        self.d_w2 = (scale * jax.random.normal(
            k[6], (hidden_dim, 1), jnp.float32)).astype(jnp.bfloat16)
        self.d_b2 = scale * jax.random.normal(k[7], (1,), jnp.float32)
        # Lane-dense padded copies for the kernel: a (B, 1) output would lower
        # to masked vst.msk stores and an N=1 MXU push; pad N to 128 and slice
        # column 0 in the wrapper instead.
        self.d_w2_pad = jnp.zeros((hidden_dim, 128),
                                  jnp.bfloat16).at[:, :1].set(self.d_w2)
        self.d_b2_pad = jnp.zeros((128,), jnp.float32).at[:1].set(self.d_b2)

    # generator: (B, Z) -> (B, C, H, W)
    def generator(self, z):
        flat = _mlp2(z, self.g_w1, self.g_b1, self.g_w2, self.g_b2,
                     _leaky_relu, _tanh)
        b = z.shape[0]
        return flat.reshape(b, self.channels, self.height, self.width)

    # discriminator: (B, C, H, W) -> (B, 1)
    def discriminator(self, img):
        b = img.shape[0]
        flat = img.reshape(b, -1)
        scores = _mlp2(flat, self.d_w1, self.d_b1,
                       self.d_w2_pad, self.d_b2_pad,
                       _leaky_relu, _sigmoid_eup)
        return scores[:, :1]

    def forward(self, generate=None, discriminate=None):
        if generate is not None:
            return self.generator(generate)
        if discriminate is not None:
            return self.discriminator(discriminate)
        return None

    __call__ = forward


# ---------------------------------------------------------------------------
# Pure-JAX reference (dtype-matched: bf16 matmul operands, f32 accum)
# ---------------------------------------------------------------------------
def _ref_mlp2(x, w1, b1, w2, b2, act1, act2):
    h = act1(jnp.dot(x.astype(jnp.bfloat16), w1,
                     preferred_element_type=jnp.float32) + b1)
    return act2(jnp.dot(h.astype(jnp.bfloat16), w2,
                        preferred_element_type=jnp.float32) + b2)


if __name__ == "__main__":
    key = jax.random.PRNGKey(0)
    gan = GAN(key=key)

    kz, ki = jax.random.split(jax.random.PRNGKey(1))
    z = jax.random.normal(kz, (2, gan.latent_dim), jnp.float32)        # latent
    img = jax.random.normal(ki, (2, gan.channels, gan.height, gan.width),
                            jnp.float32)                                # NCHW

    fake = gan(generate=z)
    score = gan(discriminate=img)
    none_out = gan()
    jax.block_until_ready(fake)
    jax.block_until_ready(score)

    assert fake.shape == (2, 4, 16, 16), fake.shape
    assert score.shape == (2, 1), score.shape
    assert none_out is None

    # correctness vs. dtype-matched pure-JAX reference
    ref_fake = _ref_mlp2(z, gan.g_w1, gan.g_b1, gan.g_w2, gan.g_b2,
                         _leaky_relu, jnp.tanh).reshape(2, 4, 16, 16)
    ref_score = _ref_mlp2(img.reshape(2, -1), gan.d_w1, gan.d_b1,
                          gan.d_w2, gan.d_b2,
                          _leaky_relu, jax.nn.sigmoid)
    # bf16 MXU operands + approx EUP reciprocal -> looser tolerance than f32
    assert jnp.allclose(fake, ref_fake, atol=2e-2), "generator mismatch"
    assert jnp.allclose(score, ref_score, atol=2e-2), "discriminator mismatch"

    print("KERNEL_OK")
</pallas_src>

<mosaic_0001>
module attributes {stable_mosaic.version = 11 : i64} {
  func.func @_mlp2_kernel(%arg0: i32, %arg1: memref<8x32xbf16, #tpu.memory_space<vmem>>, %arg2: memref<32x64xbf16, #tpu.memory_space<vmem>>, %arg3: memref<1x64xf32, #tpu.memory_space<vmem>>, %arg4: memref<64x1024xbf16, #tpu.memory_space<vmem>>, %arg5: memref<1x1024xf32, #tpu.memory_space<vmem>>, %arg6: memref<8x1024xf32, #tpu.memory_space<vmem>>) attributes {dimension_semantics = [#tpu.dimension_semantics<parallel>], iteration_bounds = array<i64: 1>, scalar_prefetch = 0 : i64, scratch_operands = 0 : i64, tpu.core_type = #tpu.core_type<tc>, window_params = [{transform_indices = @transform_0, window_bounds = array<i64: 8, 32>}, {pipeline_mode = #tpu.pipeline_mode<synchronous>, transform_indices = @transform_1, window_bounds = array<i64: 32, 64>}, {pipeline_mode = #tpu.pipeline_mode<synchronous>, transform_indices = @transform_2, window_bounds = array<i64: 1, 64>}, {pipeline_mode = #tpu.pipeline_mode<synchronous>, transform_indices = @transform_3, window_bounds = array<i64: 64, 1024>}, {pipeline_mode = #tpu.pipeline_mode<synchronous>, transform_indices = @transform_4, window_bounds = array<i64: 1, 1024>}, {transform_indices = @transform_5, window_bounds = array<i64: 8, 1024>}]} {
    %c0 = arith.constant 0 : index
    %c0_0 = arith.constant 0 : index
    %0 = vector.load %arg1[%c0, %c0_0] : memref<8x32xbf16, #tpu.memory_space<vmem>>, vector<8x32xbf16>
    %c0_1 = arith.constant 0 : index
    %c0_2 = arith.constant 0 : index
    %1 = vector.load %arg2[%c0_1, %c0_2] : memref<32x64xbf16, #tpu.memory_space<vmem>>, vector<32x64xbf16>
    %cst = arith.constant dense<0.000000e+00> : vector<8x64xf32>
    %2 = tpu.matmul %0, %1, %cst {dimension_numbers = #tpu.dot_dimension_numbers<[1], [0], [0], [1], [0, 0, 1, 1], [], []>} : vector<8x32xbf16>, vector<32x64xbf16>, vector<8x64xf32> -> vector<8x64xf32>
    %c0_3 = arith.constant 0 : index
    %c0_4 = arith.constant 0 : index
    %3 = vector.load %arg3[%c0_3, %c0_4] : memref<1x64xf32, #tpu.memory_space<vmem>>, vector<1x64xf32>
    %4 = vector.broadcast %3 : vector<1x64xf32> to vector<8x64xf32>
    %5 = arith.addf %2, %4 : vector<8x64xf32>
    %cst_5 = arith.constant 0.000000e+00 : f32
    %6 = vector.broadcast %cst_5 : f32 to vector<8x64xf32>
    %7 = arith.cmpf ogt, %5, %6 : vector<8x64xf32>
    %cst_6 = arith.constant 2.000000e-01 : f32
    %8 = vector.broadcast %cst_6 : f32 to vector<8x64xf32>
    %9 = arith.mulf %8, %5 : vector<8x64xf32>
    %10 = arith.select %7, %5, %9 : vector<8x64xi1>, vector<8x64xf32>
    %11 = arith.truncf %10 : vector<8x64xf32> to vector<8x64xbf16>
    %c0_7 = arith.constant 0 : index
    %c0_8 = arith.constant 0 : index
    %12 = vector.load %arg4[%c0_7, %c0_8] : memref<64x1024xbf16, #tpu.memory_space<vmem>>, vector<64x1024xbf16>
    %cst_9 = arith.constant dense<0.000000e+00> : vector<8x1024xf32>
    %13 = tpu.matmul %11, %12, %cst_9 {dimension_numbers = #tpu.dot_dimension_numbers<[1], [0], [0], [1], [0, 0, 1, 1], [], []>} : vector<8x64xbf16>, vector<64x1024xbf16>, vector<8x1024xf32> -> vector<8x1024xf32>
    %c0_10 = arith.constant 0 : index
    %c0_11 = arith.constant 0 : index
    %14 = vector.load %arg5[%c0_10, %c0_11] : memref<1x1024xf32, #tpu.memory_space<vmem>>, vector<1x1024xf32>
    %15 = vector.broadcast %14 : vector<1x1024xf32> to vector<8x1024xf32>
    %16 = arith.addf %13, %15 : vector<8x1024xf32>
    %17 = math.tanh %16 : vector<8x1024xf32>
    %c0_12 = arith.constant 0 : index
    %c0_13 = arith.constant 0 : index
    %18 = vector.load %arg6[%c0_12, %c0_13] : memref<8x1024xf32, #tpu.memory_space<vmem>>, vector<8x1024xf32>
    tpu.vector_store %arg6[%c0_12, %c0_13], %17 {strides = array<i32>} : memref<8x1024xf32, #tpu.memory_space<vmem>>, vector<8x1024xf32>,
    return
  }
  func.func @transform_0(%arg0: i32) -> (i32, i32) {
    %c0_i32 = arith.constant 0 : i32
    %c0_i32_0 = arith.constant 0 : i32
    return %arg0, %c0_i32 : i32, i32
  }
  func.func @transform_1(%arg0: i32) -> (i32, i32) {
    %c0_i32 = arith.constant 0 : i32
    %c0_i32_0 = arith.constant 0 : i32
    %c0_i32_1 = arith.constant 0 : i32
    return %c0_i32, %c0_i32_0 : i32, i32
  }
  func.func @transform_2(%arg0: i32) -> (i32, i32) {
    %c0_i32 = arith.constant 0 : i32
    %c0_i32_0 = arith.constant 0 : i32
    %c0_i32_1 = arith.constant 0 : i32
    return %c0_i32, %c0_i32_0 : i32, i32
  }
  func.func @transform_3(%arg0: i32) -> (i32, i32) {
    %c0_i32 = arith.constant 0 : i32
    %c0_i32_0 = arith.constant 0 : i32
    %c0_i32_1 = arith.constant 0 : i32
    return %c0_i32, %c0_i32_0 : i32, i32
  }
  func.func @transform_4(%arg0: i32) -> (i32, i32) {
    %c0_i32 = arith.constant 0 : i32
    %c0_i32_0 = arith.constant 0 : i32
    %c0_i32_1 = arith.constant 0 : i32
    return %c0_i32, %c0_i32_0 : i32, i32
  }
  func.func @transform_5(%arg0: i32) -> (i32, i32) {
    %c0_i32 = arith.constant 0 : i32
    %c0_i32_0 = arith.constant 0 : i32
    return %arg0, %c0_i32 : i32, i32
  }
}

</mosaic_0001>

<bundles_post_ra>
// kernel: tpu_custom_call.1
= control target key start
LH: loop header
LB: loop body
LE: loop exit
PB: predicated region body
PF: predicated region fallthrough
CT: control target
= control target key end

     0   :  { %10 = vsyncpa [#allocation3], 0  ;;  %s867_s0 = inlined_call_operand.hbm [shape: bf16[8,32], index: 0, kind: input, shape index: {}]   ;;  %s868_s1 = inlined_call_operand.hbm [shape: bf16[32,64], index: 1, kind: input, shape index: {}]   ;;  %s869_s2 = inlined_call_operand.vmem [shape: f32[1,64], index: 2, kind: input, shape index: {}]   ;;  %s870_s3 = inlined_call_operand.hbm [shape: bf16[64,1024], index: 3, kind: input, shape index: {}]   ;;  %s871_s4 = inlined_call_operand.hbm [shape: f32[1,1024], index: 4, kind: input, shape index: {}]   ;;  %s872_s5 = inlined_call_operand.hbm [shape: f32[8,1024], index: 5, kind: output, shape index: {}]  }
   0x1   :  { %11 = vsyncpa [#allocation6], 0 }
   0x2   :  { %12 = vsyncpa [#allocation9], 0  ;;  %s29_s20 = sshll.u32 %s868_s1, 4  ;;  %s30_s20 = int_to_ptr.hbm [resolvable:$true] %s29_s20 }
   0x3   :  { %13 = vsyncpa [#allocation4], 0  ;;  %s809_s21 = smov [#allocation5]   ;;  %s19_s25 = sshll.u32 %s867_s0, 4  ;;  %s20_s25 = int_to_ptr.hbm [resolvable:$true] %s19_s25 }
   0x4   :  { %s31_s22 = sshll.u32 %s809_s21, 4  ;;  %s810_s26 = smov 64   ;;  %s32_s22 = int_to_ptr.vmem [resolvable:$true] %s31_s22 }
   0x5   :  { %s811_s27 = smov 4   ;;  %s812_s28 = smov [#allocation2]  }
   0x6   :  { %37 = dma.hbm_to_vmem [thread:$0]  %s30_s20, 256, %s32_s22, [#allocation6], %s810_s26, %s810_s26, %s811_s27  }
   0x7   :  { %s21_s29 = sshll.u32 %s812_s28, 4  ;;  %s44_s7 = sshll.u32 %s870_s3, 4  ;;  %s22_s29 = int_to_ptr.vmem [resolvable:$true] %s21_s29  ;;  %s45_s7 = int_to_ptr.hbm [resolvable:$true] %s44_s7 }
   0x8   :  { %24 = dma.hbm_to_vmem [thread:$0]  %s20_s25, 64, %s22_s29, [#allocation3]  }
   0x9   :  { %s813_s1 = smov [#allocation7]   ;;  %s58_s0 = sshll.u32 %s871_s4, 4  ;;  %s59_s0 = int_to_ptr.hbm [resolvable:$true] %s58_s0 }
   0xa   :  { %s46_s8 = sshll.u32 %s813_s1, 4  ;;  %s814_s11 = smov 512   ;;  %s47_s8 = int_to_ptr.vmem [resolvable:$true] %s46_s8 }
   0xb   :  { %s815_s12 = smov 32   ;;  %s816_s13 = smov [#allocation8]  }
   0xc   :  { %52 = dma.hbm_to_vmem [thread:$0]  %s45_s7, 4096, %s47_s8, [#allocation6], %s814_s11, %s814_s11, %s815_s12  }
   0xd   :  { %s60_s14 = sshll.u32 %s816_s13, 4  ;;  %s61_s14 = int_to_ptr.vmem [resolvable:$true] %s60_s14 }
   0xe   :  { %63 = dma.hbm_to_vmem [thread:$0]  %s59_s0, 128, %s61_s14, [#allocation9]  }
   0xf   :  { %801 = dma.done.wait [#allocation3], 64  }
  0x10   :  { %802 = vsyncadd [#allocation3], 4294967232 }
  0x11   :  { %803 = dma.done.wait [#allocation6], 4352  }
  0x12   :  { %804 = vsyncadd [#allocation6], 4294962944 }
  0x13   :  { %805 = dma.done.wait [#allocation9], 128  }
  0x14   :  { %806 = vsyncadd [#allocation9], 4294967168  ;;  %v622_v0 = vld [vmem:[#allocation5 + $0x8] sm:$0xff]  ;;  %v621_v1 = vld [vmem:[#allocation5] sm:$0xff]  ;;  %vm102_vm0 = vcmask 261120   ;;  %vm333_vm2 = vcmask 523264  }
  0x15   :  { %v583_v2 = vld [vmem:[#allocation7 + $0xc0] sm:$0xf]  ;;  %v647_v4 = vld [vmem:[#allocation7 + $0xc4] sm:$0xf]  ;;  %112 = vmatpush.bf16.msra.mxu0 %v622_v0  ;;  %v591_v7 = vld [vmem:[#allocation7 + $0xc8] sm:$0xf] }
  0x16   :  { %v651_v3 = vld [vmem:[#allocation7 + $0xdc] sm:$0xf0]  ;;  %v585_v6 = vld [vmem:[#allocation7 + $0xe0] sm:$0xf0]  ;;  %v652_v8 = vld [vmem:[#allocation7 + $0xe4] sm:$0xf0] }
  0x17   :  { %v584_v5 = vor.u32 %v651_v3, %v583_v2  ;;  %v588_v9 = vor.u32 %v647_v4, %v585_v6  ;;  %v592_v10 = vor.u32 %v652_v8, %v591_v7  ;;  %v648_v11 = vld [vmem:[#allocation7 + $0xcc] sm:$0xf]  ;;  %v551_v13 = vld [vmem:[#allocation7 + $0x80] sm:$0xf]  ;;  %v639_v16 = vld [vmem:[#allocation7 + $0x84] sm:$0xf] }
  0x18   :  { %v593_v12 = vld [vmem:[#allocation7 + $0xe8] sm:$0xf0]  ;;  %v643_v15 = vld [vmem:[#allocation7 + $0x9c] sm:$0xf0]  ;;  %v553_v17 = vld [vmem:[#allocation7 + $0xa0] sm:$0xf0] }
  0x19   :  { %341 = vmatpush.bf16.msra.mxu1 %v584_v5  ;;  %v596_v14 = vor.u32 %v648_v11, %v593_v12  ;;  %354 = vmatpush.bf16.msra.mxu2 %v588_v9  ;;  %v552_v18 = vor.u32 %v643_v15, %v551_v13  ;;  %v556_v19 = vor.u32 %v639_v16, %v553_v17  ;;  %v559_v20 = vld [vmem:[#allocation7 + $0x88] sm:$0xf]  ;;  %v640_v22 = vld [vmem:[#allocation7 + $0x8c] sm:$0xf]  ;;  %v519_v27 = vld [vmem:[#allocation7 + $0x40] sm:$0xf] }
  0x1a   :  { %367 = vmatpush.bf16.msra.mxu3 %v592_v10  ;;  %v644_v21 = vld [vmem:[#allocation7 + $0xa4] sm:$0xf0]  ;;  %113 = vmatpush.bf16.msra.mxu0 %v621_v1  ;;  %v81_v23 = vld [vmem:[#allocation2] sm:$0xf]  ;;  %v635_v28 = vld [vmem:[#allocation7 + $0x5c] sm:$0xf0] }
  0x1b   :  { %v560_v24 = vor.u32 %v644_v21, %v559_v20  ;;  %v561_v25 = vld [vmem:[#allocation7 + $0xa8] sm:$0xf0]  ;;  %v631_v29 = vld [vmem:[#allocation7 + $0x44] sm:$0xf]  ;;  %v520_v30 = vor.u32 %v635_v28, %v519_v27  ;;  %v527_v32 = vld [vmem:[#allocation7 + $0x48] sm:$0xf] }
  0x1c   :  { %v564_v26 = vor.u32 %v640_v22, %v561_v25  ;;  %v521_v31 = vld [vmem:[#allocation7 + $0x60] sm:$0xf0]  ;;  %v636_v33 = vld [vmem:[#allocation7 + $0x64] sm:$0xf0]  ;;  %v632_v36 = vld [vmem:[#allocation7 + $0x4c] sm:$0xf] }
  0x1d   :  { %342 = vmatpush.bf16.msra.mxu1 %v552_v18  ;;  %484 = vmatmul.msk.bf16.vlgmr.msra.gmra.mxu0 %vm102_vm0, %v81_v23  ;;  %v524_v34 = vor.u32 %v631_v29, %v521_v31  ;;  %v528_v35 = vor.u32 %v636_v33, %v527_v32  ;;  %v529_v37 = vld [vmem:[#allocation7 + $0x68] sm:$0xf0]  ;;  %v487_v39 = vld [vmem:[#allocation7] sm:$0xf]  ;;  %v623_v41 = vld [vmem:[#allocation7 + $0x4] sm:$0xf] }
  0x1e   :  { %380 = vmatpush.bf16.msrb.mxu0 %v596_v14  ;;  %355 = vmatpush.bf16.msra.mxu2 %v556_v19  ;;  %v532_v38 = vor.u32 %v632_v36, %v529_v37  ;;  %v627_v40 = vld [vmem:[#allocation7 + $0x1c] sm:$0xf0]  ;;  %v489_v43 = vld [vmem:[#allocation7 + $0x20] sm:$0xf0]  ;;  %v495_v44 = vld [vmem:[#allocation7 + $0x8] sm:$0xf] }
  0x1f   :  { %368 = vmatpush.bf16.msra.mxu3 %v560_v24  ;;  %v488_v42 = vor.u32 %v627_v40, %v487_v39  ;;  %v628_v45 = vld [vmem:[#allocation7 + $0x24] sm:$0xf0]  ;;  %v492_v46 = vor.u32 %v623_v41, %v489_v43  ;;  %v624_v48 = vld [vmem:[#allocation7 + $0xc] sm:$0xf]  ;;  %v649_v51 = vld [vmem:[#allocation7 + $0xd4] sm:$0xf] }
  0x20   :  { %v496_v47 = vor.u32 %v628_v45, %v495_v44  ;;  %v497_v49 = vld [vmem:[#allocation7 + $0x28] sm:$0xf0]  ;;  %v601_v52 = vld [vmem:[#allocation7 + $0xf0] sm:$0xf0]  ;;  %v607_v54 = vld [vmem:[#allocation7 + $0xd8] sm:$0xf] }
  0x21   :  { %343 = vmatpush.bf16.msra.mxu1 %v520_v30  ;;  %v500_v50 = vor.u32 %v624_v48, %v497_v49  ;;  %v604_v53 = vor.u32 %v649_v51, %v601_v52  ;;  %v654_v55 = vld [vmem:[#allocation7 + $0xf4] sm:$0xf0]  ;;  %v599_v56 = vld [vmem:[#allocation7 + $0xd0] sm:$0xf]  ;;  %v650_v59 = vld [vmem:[#allocation7 + $0xdc] sm:$0xf] }
  0x22   :  { %381 = vmatpush.bf16.msrb.mxu0 %v564_v26  ;;  %356 = vmatpush.bf16.msra.mxu2 %v524_v34  ;;  %v608_v57 = vor.u32 %v654_v55, %v607_v54  ;;  %v653_v58 = vld [vmem:[#allocation7 + $0xec] sm:$0xf0]  ;;  %v609_v60 = vld [vmem:[#allocation7 + $0xf8] sm:$0xf0]  ;;  %v641_v63 = vld [vmem:[#allocation7 + $0x94] sm:$0xf] }
  0x23   :  { %369 = vmatpush.bf16.msra.mxu3 %v528_v35  ;;  %v600_v61 = vor.u32 %v653_v58, %v599_v56  ;;  %v612_v62 = vor.u32 %v650_v59, %v609_v60  ;;  %v569_v0 = vld [vmem:[#allocation7 + $0xb0] sm:$0xf0]  ;;  %v575_v1 = vld [vmem:[#allocation7 + $0x98] sm:$0xf]  ;;  %v567_v4 = vld [vmem:[#allocation7 + $0x90] sm:$0xf] }
  0x24   :  { %v572_v2 = vor.u32 %v641_v63, %v569_v0  ;;  %v646_v3 = vld [vmem:[#allocation7 + $0xb4] sm:$0xf0]  ;;  %v645_v5 = vld [vmem:[#allocation7 + $0xac] sm:$0xf0]  ;;  %v642_v8 = vld [vmem:[#allocation7 + $0x9c] sm:$0xf] }
  0x25   :  { %344 = vmatpush.bf16.msra.mxu1 %v488_v42  ;;  %v576_v6 = vor.u32 %v646_v3, %v575_v1  ;;  %v568_v7 = vor.u32 %v645_v5, %v567_v4  ;;  %v577_v9 = vld [vmem:[#allocation7 + $0xb8] sm:$0xf0]  ;;  %v633_v10 = vld [vmem:[#allocation7 + $0x54] sm:$0xf]  ;;  %v543_v13 = vld [vmem:[#allocation7 + $0x58] sm:$0xf] }
  0x26   :  { %382 = vmatpush.bf16.msrb.mxu0 %v532_v38  ;;  %357 = vmatpush.bf16.msra.mxu2 %v492_v46  ;;  %v580_v11 = vor.u32 %v642_v8, %v577_v9  ;;  %v537_v12 = vld [vmem:[#allocation7 + $0x70] sm:$0xf0]  ;;  %v638_v14 = vld [vmem:[#allocation7 + $0x74] sm:$0xf0]  ;;  %v535_v16 = vld [vmem:[#allocation7 + $0x50] sm:$0xf] }
  0x27   :  { %370 = vmatpush.bf16.msra.mxu3 %v496_v47  ;;  %v540_v15 = vor.u32 %v633_v10, %v537_v12  ;;  %v637_v17 = vld [vmem:[#allocation7 + $0x6c] sm:$0xf0]  ;;  %v634_v18 = vld [vmem:[#allocation7 + $0x5c] sm:$0xf]  ;;  %v544_v19 = vor.u32 %v638_v14, %v543_v13  ;;  %v625_v21 = vld [vmem:[#allocation7 + $0x14] sm:$0xf] }
  0x28   :  { %v545_v20 = vld [vmem:[#allocation7 + $0x78] sm:$0xf0]  ;;  %v505_v22 = vld [vmem:[#allocation7 + $0x30] sm:$0xf0]  ;;  %v536_v23 = vor.u32 %v637_v17, %v535_v16  ;;  %v511_v25 = vld [vmem:[#allocation7 + $0x18] sm:$0xf] }
  0x29   :  { %393 = vmatpush.bf16.msrb.mxu1 %v600_v61  ;;  %v548_v24 = vor.u32 %v634_v18, %v545_v20  ;;  %v630_v26 = vld [vmem:[#allocation7 + $0x34] sm:$0xf0]  ;;  %v503_v27 = vld [vmem:[#allocation7 + $0x10] sm:$0xf]  ;;  %v626_v29 = vld [vmem:[#allocation7 + $0x1c] sm:$0xf]  ;;  %v508_v31 = vor.u32 %v625_v21, %v505_v22 }
  0x2a   :  { %383 = vmatpush.bf16.msrb.mxu0 %v500_v50  ;;  %406 = vmatpush.bf16.msrb.mxu2 %v604_v53  ;;  %v629_v28 = vld [vmem:[#allocation7 + $0x2c] sm:$0xf0]  ;;  %v513_v30 = vld [vmem:[#allocation7 + $0x38] sm:$0xf0]  ;;  %v512_v32 = vor.u32 %v630_v26, %v511_v25  ;;  %v664_v35 = vld [vmem:[%s869_s2] ss:$0 sm:$0xff] }
  0x2b   :  { %419 = vmatpush.bf16.msrb.mxu3 %v608_v57  ;;  %v504_v33 = vor.u32 %v629_v28, %v503_v27  ;;  %v516_v34 = vor.u32 %v626_v29, %v513_v30  ;;  %v155_v42 = vld [vmem:[#allocation8] sm:$0xff]  ;;  %s817_s2 = smov [#allocation10]   ;;  %s464_s18 = sshll.u32 %s872_s5, 4  ;;  %s465_s18 = int_to_ptr.hbm [resolvable:$true] %s464_s18 }
  0x2c   :  { %v157_v43 = vperm.slane %v155_v42, 0  ;;  %v160_v44 = vperm.slane %v155_v42, 3  ;;  %v158_v49 = vperm.slane %v155_v42, 1  ;;  %v159_v50 = vperm.slane %v155_v42, 2  ;;  %s462_s15 = sshll.u32 %s817_s2, 4  ;;  %s463_s15 = int_to_ptr.vmem [resolvable:$true] %s462_s15 }
  0x2d   :  { %394 = vmatpush.bf16.msrb.mxu1 %v568_v7  ;;  %v161_v59 = vperm.slane %v155_v42, 4  ;;  %v164_v61 = vperm.slane %v155_v42, 7  ;;  %v162_v5 = vperm.slane %v155_v42, 5 }
  0x2e   :  { %432 = vmatpush.bf16.msra.mxu0 %v612_v62  ;;  %407 = vmatpush.bf16.msrb.mxu2 %v572_v2 }
  0x2f   :  { %420 = vmatpush.bf16.msrb.mxu3 %v576_v6  ;;  %v163_v6 = vperm.slane %v155_v42, 6 }
  0x31   :  { %395 = vmatpush.bf16.msrb.mxu1 %v536_v23 }
  0x32   :  { %433 = vmatpush.bf16.msra.mxu0 %v580_v11  ;;  %408 = vmatpush.bf16.msrb.mxu2 %v540_v15 }
  0x33   :  { %421 = vmatpush.bf16.msrb.mxu3 %v544_v19 }
  0x35   :  { %396 = vmatpush.bf16.msrb.mxu1 %v504_v33 }
  0x36   :  { %434 = vmatpush.bf16.msra.mxu0 %v548_v24  ;;  %409 = vmatpush.bf16.msrb.mxu2 %v508_v31 }
  0x37   :  { %422 = vmatpush.bf16.msrb.mxu3 %v512_v32 }
  0x3a   :  { %435 = vmatpush.bf16.msra.mxu0 %v516_v34 }
  0x9a   :  { %v115_v36 = vpop.f32.mrf.mxu0 }
  0x9b   :  { %v116_v37 = vadd.f32 %v664_v35, %v115_v36 }
  0x9d   :  { %vm119_vm1 = vcmp.gt.f32.partialorder %v116_v37, 0.0  ;;  %v120_v38 = vmul.f32 0.2, %v116_v37 }
  0x9f   :  { %v121_v39 = vsel %vm119_vm1, %v116_v37, %v120_v38 }
  0xa0   :  { %v122_v40 = vpack.c.bf16 %v121_v39, %v121_v39 }
  0xa2   :  { %v117_v41 = vpop.f32.mrf.mxu0  ;;  %613 = vmatmul.msk.bf16.vlgmr.msra.gmra.mxu1 %vm333_vm2, %v122_v40  ;;  %614 = vmatmul.msk.bf16.vlgmr.msra.gmra.mxu2 %vm333_vm2, %v122_v40 }
  0xa3   :  { %615 = vmatmul.msk.bf16.vlgmr.msra.gmra.mxu3 %vm333_vm2, %v122_v40  ;;  %616 = vmatmul.msk.bf16.vlgmr.msrb.gmra.mxu0 %vm333_vm2, %v122_v40 }
  0xb2   :  { %617 = vmatmul.msk.bf16.vlgmr.msrb.gmra.mxu1 %vm333_vm2, %v122_v40  ;;  %618 = vmatmul.msk.bf16.vlgmr.msrb.gmra.mxu2 %vm333_vm2, %v122_v40 }
  0xb3   :  { %619 = vmatmul.msk.bf16.vlgmr.msrb.gmra.mxu3 %vm333_vm2, %v122_v40  ;;  %620 = vmatmul.msk.bf16.vlgmr.msra.gmra.mxu0 %vm333_vm2, %v122_v40 }
 0x11f   :  { %v346_v45 = vpop.f32.mrf.mxu1 }
 0x120   :  { %v347_v46 = vadd.f32 %v346_v45, %v157_v43  ;;  %v385_v47 = vpop.f32.mrf.mxu0 }
 0x121   :  { %v386_v48 = vadd.f32 %v385_v47, %v160_v44 }
 0x122   :  { %665 = vtanh.f32 %v347_v46 }
 0x123   :  { %667 = vtanh.f32 %v386_v48 }
 0x125   :  { %v359_v51 = vpop.f32.mrf.mxu2 }
 0x126   :  { %v360_v52 = vadd.f32 %v359_v51, %v158_v49  ;;  %v372_v53 = vpop.f32.mrf.mxu3 }
 0x127   :  { %v373_v54 = vadd.f32 %v372_v53, %v159_v50  ;;  %v348_v55 = vpop.f32.mrf.mxu1 }
 0x128   :  { %v666_v56 = vpop.eup %665  ;;  %669 = vtanh.f32 %v360_v52  ;;  %v387_v57 = vpop.f32.mrf.mxu0 }
 0x129   :  { %v668_v58 = vpop.eup %667  ;;  %449 = vst [vmem:[#allocation10] sm:$0xff] %v666_v56  ;;  %671 = vtanh.f32 %v373_v54 }
 0x12a   :  { %452 = vst [vmem:[#allocation10 + $0x18] sm:$0xff] %v668_v58 }
 0x12d   :  { %v361_v60 = vpop.f32.mrf.mxu2 }
 0x12e   :  { %v670_v62 = vpop.eup %669  ;;  %v374_v63 = vpop.f32.mrf.mxu3 }
 0x12f   :  { %v672_v0 = vpop.eup %671  ;;  %450 = vst [vmem:[#allocation10 + $0x8] sm:$0xff] %v670_v62  ;;  %v398_v1 = vpop.f32.mrf.mxu1 }
 0x130   :  { %451 = vst [vmem:[#allocation10 + $0x10] sm:$0xff] %v672_v0  ;;  %v399_v2 = vadd.f32 %v398_v1, %v161_v59  ;;  %v437_v3 = vpop.f32.mrf.mxu0 }
 0x131   :  { %v438_v4 = vadd.f32 %v437_v3, %v164_v61 }
 0x132   :  { %673 = vtanh.f32 %v399_v2 }
 0x133   :  { %675 = vtanh.f32 %v438_v4 }
 0x135   :  { %v411_v7 = vpop.f32.mrf.mxu2 }
 0x136   :  { %v412_v8 = vadd.f32 %v411_v7, %v162_v5  ;;  %v424_v9 = vpop.f32.mrf.mxu3 }
 0x137   :  { %v425_v10 = vadd.f32 %v424_v9, %v163_v6  ;;  %v400_v11 = vpop.f32.mrf.mxu1 }
 0x138   :  { %v674_v12 = vpop.eup %673  ;;  %677 = vtanh.f32 %v412_v8  ;;  %v439_v13 = vpop.f32.mrf.mxu0 }
 0x139   :  { %v676_v14 = vpop.eup %675  ;;  %453 = vst [vmem:[#allocation10 + $0x20] sm:$0xff] %v674_v12  ;;  %679 = vtanh.f32 %v425_v10 }
 0x13a   :  { %456 = vst [vmem:[#allocation10 + $0x38] sm:$0xff] %v676_v14 }
 0x13d   :  { %v413_v15 = vpop.f32.mrf.mxu2 }
 0x13e   :  { %v678_v16 = vpop.eup %677  ;;  %v426_v17 = vpop.f32.mrf.mxu3 }
 0x13f   :  { %v680_v18 = vpop.eup %679  ;;  %454 = vst [vmem:[#allocation10 + $0x28] sm:$0xff] %v678_v16 }
 0x140   :  { %455 = vst [vmem:[#allocation10 + $0x30] sm:$0xff] %v680_v18 }
 0x141   :  { %467 = dma.vmem_to_hbm [thread:$0]  %s463_s15, 1024, %s465_s18, [#allocation4]  }
 0x142   :  { %807 = dma.done.wait [#allocation4], 1024  }
 0x143   :  { %808 = vsyncadd [#allocation4], 4294966272 }
 0x144   :  { %472 = vsyncpa [#allocation3], 1 }
 0x145   :  { %473 = vsyncpa [#allocation6], 1 }
 0x146   :  { %474 = vsyncpa [#allocation9], 1 }
 0x147   :  { %475 = vsyncpa [#allocation4], 1 }

</bundles_post_ra>
